<compile_context>
chip_gen: v7x
topology: tpu7x:2x2x1
jax: 0.10.0
libtpu: 0.0.40
codegen_flags: <defaults>
</compile_context>

<pallas_src>
import functools

import jax
import jax.numpy as jnp
from jax.experimental import pallas as pl
from jax.experimental.pallas import tpu as pltpu


def _temporal_kv_kernel(bb, x_ref, w_ref, b_ref, key_ref, val_ref):
    w = w_ref[...]                                    # (96, 64) fused Wk;Wv
    b = b_ref[...]                                    # (96, 1)  fused bk;bv
    for i in range(bb):                               # bb is small & static
        x = x_ref[i]                                  # (64, TL), length on lanes
        y = jnp.dot(w, x, preferred_element_type=jnp.float32) + b   # (96, TL)
        key_ref[i] = y[:32].astype(key_ref.dtype)     # (32, TL) sublane-aligned
        val_ref[i] = y[32:].astype(val_ref.dtype)     # (64, TL) sublane-aligned


def _divisors(n):
    return [d for d in range(1, n + 1) if n % d == 0]


def _choose_tiles(B, L_pad, *, tl_cap=4096, budget_elems=7168, target_elems=2048):
    """Pick (batch tile, length tile).  L_pad is a multiple of 128.

    budget_elems keeps the double-buffered blocks + f32 temporaries
    (~1664 * bb * tl bytes) under ~12 MiB so the default scoped-VMEM limit is
    respected on v5e/v6e/v7x without overriding vmem_limit_bytes."""
    tl = min(L_pad, tl_cap)
    tl -= tl % 128
    while L_pad % tl:
        tl -= 128
    bb = 1
    if tl < target_elems:                 # small L: block over batch too
        for d in _divisors(B):
            if d * tl > budget_elems:
                break
            bb = d
            if d * tl >= target_elems:
                break
        # Keep >= 2 grid steps when the problem allows it (v7x megacore).
        while bb > 1 and (B // bb) * (L_pad // tl) < 2:
            bb = [d for d in _divisors(B) if d < bb][-1]
    return bb, tl


def temporal_key_value(x, params, *, out_dtype=None):
    """x: (B, 64, L) -> (key (B, 32, L), value (B, 64, L))."""
    B, C, L = x.shape
    assert C == 64, C
    x = x.astype(jnp.float32)
    out_dtype = jnp.float32 if out_dtype is None else out_dtype

    # Fuse the two heads: one (96, 64) weight / (96, 1) bias.
    w = jnp.concatenate([params["wk"], params["wv"]], axis=0)   # (96, 64)
    b = jnp.concatenate([params["bk"], params["bv"]], axis=0)   # (96, 1)

    # Pad L up to a multiple of 128 so every store is lane-dense / unmasked.
    L_pad = ((L + 127) // 128) * 128
    if L_pad != L:
        x = jnp.pad(x, ((0, 0), (0, 0), (0, L_pad - L)))

    bb, tl = _choose_tiles(B, L_pad)
    grid = (B // bb, L_pad // tl)

    const = lambda bi, li: (0, 0)        # weights/bias: fetched once, VMEM-resident
    tile = lambda bi, li: (bi, 0, li)    # x / outputs: per-(batch, length) block

    cost = pl.CostEstimate(
        flops=2 * 96 * 64 * B * L_pad,
        bytes_accessed=(64 + 96) * B * L_pad * 4,
        transcendentals=0,
    )

    key, value = pl.pallas_call(
        functools.partial(_temporal_kv_kernel, bb),
        out_shape=(jax.ShapeDtypeStruct((B, 32, L_pad), out_dtype),
                   jax.ShapeDtypeStruct((B, 64, L_pad), out_dtype)),
        grid=grid,
        in_specs=[
            pl.BlockSpec((bb, 64, tl), tile),   # x
            pl.BlockSpec((96, 64), const),      # fused W
            pl.BlockSpec((96, 1), const),       # fused bias
        ],
        out_specs=(
            pl.BlockSpec((bb, 32, tl), tile),   # key
            pl.BlockSpec((bb, 64, tl), tile),   # value
        ),
        compiler_params=pltpu.CompilerParams(
            dimension_semantics=("parallel", "parallel")),
        cost_estimate=cost,
    )(x, w, b)

    if L_pad != L:
        key = key[:, :, :L]
        value = value[:, :, :L]
    return key, value


def init_params(key):
    """Mirror nn.Conv1d default init (U(-1/sqrt(fan_in), 1/sqrt(fan_in)),
    fan_in = in_channels * kernel_size = 64).  Weights stored (out, in),
    biases stored (out, 1) so they broadcast along lanes inside the kernel."""
    def conv1x1(k, c_in, c_out):
        kw, kb = jax.random.split(k)
        bound = 1.0 / jnp.sqrt(jnp.float32(c_in))
        w = jax.random.uniform(kw, (c_out, c_in), jnp.float32, -bound, bound)
        b = jax.random.uniform(kb, (c_out, 1), jnp.float32, -bound, bound)
        return w, b

    kk, kv = jax.random.split(key)
    wk, bk = conv1x1(kk, 64, 32)
    wv, bv = conv1x1(kv, 64, 64)
    return dict(wk=wk, bk=bk, wv=wv, bv=bv)


def _reference(x, p):
    """Pure-JAX reference of the PyTorch forward (two 1x1 Conv1d heads)."""
    key = jnp.einsum("oc,bcl->bol", p["wk"], x) + p["bk"][None]
    value = jnp.einsum("oc,bcl->bol", p["wv"], x) + p["bv"][None]
    return key, value


def _check(B, L, kx, params):
    x = jax.random.normal(kx, (B, 64, L), dtype=jnp.float32)
    key, value = temporal_key_value(x, params)
    key = jax.block_until_ready(key)
    value = jax.block_until_ready(value)
    ref_key, ref_value = _reference(x, params)
    assert key.shape == (B, 32, L), key.shape
    assert value.shape == (B, 64, L), value.shape
    assert jnp.allclose(key, ref_key, atol=1e-4, rtol=1e-4), (
        float(jnp.max(jnp.abs(key - ref_key))))
    assert jnp.allclose(value, ref_value, atol=1e-4, rtol=1e-4), (
        float(jnp.max(jnp.abs(value - ref_value))))


if __name__ == "__main__":
    rng = jax.random.PRNGKey(0)
    kx1, kx2, kp = jax.random.split(rng, 3)
    params = init_params(kp)

    _check(2, 256, kx1, params)   # lane-aligned L, batch-parallel grid
    _check(3, 200, kx2, params)   # non-128-multiple L: padded + sliced path

    print("KERNEL_OK")
</pallas_src>

<mosaic_0001>
module attributes {stable_mosaic.version = 11 : i64} {
  func.func @_temporal_kv_kernel(%arg0: i32, %arg1: i32, %arg2: memref<1x64x256xf32, #tpu.memory_space<vmem>>, %arg3: memref<96x64xf32, #tpu.memory_space<vmem>>, %arg4: memref<96x1xf32, #tpu.memory_space<vmem>>, %arg5: memref<1x32x256xf32, #tpu.memory_space<vmem>>, %arg6: memref<1x64x256xf32, #tpu.memory_space<vmem>>) attributes {dimension_semantics = [#tpu.dimension_semantics<parallel>, #tpu.dimension_semantics<parallel>], iteration_bounds = array<i64: 2, 1>, scalar_prefetch = 0 : i64, scratch_operands = 0 : i64, tpu.core_type = #tpu.core_type<tc>, window_params = [{transform_indices = @transform_0, window_bounds = array<i64: 1, 64, 256>}, {pipeline_mode = #tpu.pipeline_mode<synchronous>, transform_indices = @transform_1, window_bounds = array<i64: 96, 64>}, {pipeline_mode = #tpu.pipeline_mode<synchronous>, transform_indices = @transform_2, window_bounds = array<i64: 96, 1>}, {transform_indices = @transform_3, window_bounds = array<i64: 1, 32, 256>}, {transform_indices = @transform_4, window_bounds = array<i64: 1, 64, 256>}]} {
    %c0 = arith.constant 0 : index
    %c0_0 = arith.constant 0 : index
    %0 = vector.load %arg3[%c0, %c0_0] : memref<96x64xf32, #tpu.memory_space<vmem>>, vector<96x64xf32>
    %c0_1 = arith.constant 0 : index
    %c0_2 = arith.constant 0 : index
    %1 = vector.load %arg4[%c0_1, %c0_2] : memref<96x1xf32, #tpu.memory_space<vmem>>, vector<96x1xf32>
    %c0_3 = arith.constant 0 : index
    %c0_4 = arith.constant 0 : index
    %c0_5 = arith.constant 0 : index
    %2 = vector.load %arg2[%c0_3, %c0_4, %c0_5] : memref<1x64x256xf32, #tpu.memory_space<vmem>>, vector<1x64x256xf32>
    %3 = vector.shape_cast %2 : vector<1x64x256xf32> to vector<64x256xf32>
    %cst = arith.constant dense<0.000000e+00> : vector<96x256xf32>
    %4 = tpu.matmul %0, %3, %cst {dimension_numbers = #tpu.dot_dimension_numbers<[1], [0], [0], [1], [0, 0, 1, 1], [], []>} : vector<96x64xf32>, vector<64x256xf32>, vector<96x256xf32> -> vector<96x256xf32>
    %5 = vector.broadcast %1 : vector<96x1xf32> to vector<96x256xf32>
    %6 = arith.addf %4, %5 : vector<96x256xf32>
    %7 = vector.extract_strided_slice %6 {offsets = [0, 0], sizes = [32, 256], strides = [1, 1]} : vector<96x256xf32> to vector<32x256xf32>
    %c0_6 = arith.constant 0 : index
    %c0_7 = arith.constant 0 : index
    %c0_8 = arith.constant 0 : index
    %8 = vector.load %arg5[%c0_6, %c0_7, %c0_8] : memref<1x32x256xf32, #tpu.memory_space<vmem>>, vector<1x32x256xf32>
    %9 = vector.shape_cast %8 : vector<1x32x256xf32> to vector<32x256xf32>
    %10 = vector.shape_cast %7 : vector<32x256xf32> to vector<1x32x256xf32>
    tpu.vector_store %arg5[%c0_6, %c0_7, %c0_8], %10 {strides = array<i32>} : memref<1x32x256xf32, #tpu.memory_space<vmem>>, vector<1x32x256xf32>,
    %11 = vector.extract_strided_slice %6 {offsets = [32, 0], sizes = [64, 256], strides = [1, 1]} : vector<96x256xf32> to vector<64x256xf32>
    %c0_9 = arith.constant 0 : index
    %c0_10 = arith.constant 0 : index
    %c0_11 = arith.constant 0 : index
    %12 = vector.load %arg6[%c0_9, %c0_10, %c0_11] : memref<1x64x256xf32, #tpu.memory_space<vmem>>, vector<1x64x256xf32>
    %13 = vector.shape_cast %12 : vector<1x64x256xf32> to vector<64x256xf32>
    %14 = vector.shape_cast %11 : vector<64x256xf32> to vector<1x64x256xf32>
    tpu.vector_store %arg6[%c0_9, %c0_10, %c0_11], %14 {strides = array<i32>} : memref<1x64x256xf32, #tpu.memory_space<vmem>>, vector<1x64x256xf32>,
    return
  }
  func.func @transform_0(%arg0: i32, %arg1: i32) -> (i32, i32, i32) {
    %c0_i32 = arith.constant 0 : i32
    %c0_i32_0 = arith.constant 0 : i32
    return %arg0, %c0_i32, %arg1 : i32, i32, i32
  }
  func.func @transform_1(%arg0: i32, %arg1: i32) -> (i32, i32) {
    %c0_i32 = arith.constant 0 : i32
    %c0_i32_0 = arith.constant 0 : i32
    %c0_i32_1 = arith.constant 0 : i32
    return %c0_i32, %c0_i32_0 : i32, i32
  }
  func.func @transform_2(%arg0: i32, %arg1: i32) -> (i32, i32) {
    %c0_i32 = arith.constant 0 : i32
    %c0_i32_0 = arith.constant 0 : i32
    %c0_i32_1 = arith.constant 0 : i32
    return %c0_i32, %c0_i32_0 : i32, i32
  }
  func.func @transform_3(%arg0: i32, %arg1: i32) -> (i32, i32, i32) {
    %c0_i32 = arith.constant 0 : i32
    %c0_i32_0 = arith.constant 0 : i32
    return %arg0, %c0_i32, %arg1 : i32, i32, i32
  }
  func.func @transform_4(%arg0: i32, %arg1: i32) -> (i32, i32, i32) {
    %c0_i32 = arith.constant 0 : i32
    %c0_i32_0 = arith.constant 0 : i32
    return %arg0, %c0_i32, %arg1 : i32, i32, i32
  }
}

</mosaic_0001>

<bundles_post_ra>
// kernel: tpu_custom_call.1
= control target key start
LH: loop header
LB: loop body
LE: loop exit
PB: predicated region body
PF: predicated region fallthrough
CT: control target
= control target key end

     0   :  { %10 = vsyncpa [#allocation3], 0  ;;  %s1266_s0 = inlined_call_operand.vmem [shape: f32[2,64,256], index: 0, kind: input, shape index: {}]   ;;  %s1267_s1 = inlined_call_operand.vmem [shape: f32[96,64], index: 1, kind: input, shape index: {}]   ;;  %s1268_s2 = inlined_call_operand.vmem [shape: f32[96,1], index: 2, kind: input, shape index: {}]   ;;  %s1269_s3 = inlined_call_operand.hbm [shape: f32[2,32,256], index: 3, kind: output, shape index: {0}]   ;;  %s1270_s4 = inlined_call_operand.hbm [shape: f32[2,64,256], index: 4, kind: output, shape index: {1}]  }
   0x1   :  { %12 = vsyncpa [#allocation3 + $0x1], 0 }
   0x2   :  { %13 = vsyncpa [#allocation5], 0 }
   0x3   :  { %15 = vsyncpa [#allocation5 + $0x1], 0  ;;  %s957_s15 = smov 0   ;;  %s959_s16 = smov 0  }
   0x4   :  { %s961_s17 = smov 0   ;;  %s963_s18 = smov 0  }
   0x5   :  { %s965_s19 = smov 0   ;;  %s967_s20 = smov 0  }
   0x6 LB: > { %s692_s21 = sadd.s32 4294967295, %s924_s20   ;;  %s693_s22 = sadd.s32 4294967294, %s924_s20   ;;  %s924_s20 = sphi %s967_s20, %s21_s20   ;;  %s920_s19 = sphi %s965_s19, %s1277_s19   ;;  %s916_s18 = sphi %s963_s18, %s1276_s18   ;;  %s912_s17 = sphi %s961_s17, %s1275_s17   ;;  %s908_s16 = sphi %s959_s16, %s1274_s16   ;;  %s904_s15 = sphi %s957_s15, %s1273_s15  }
   0x7   : > { %s33_s23 = sadd.s32 1, %s920_s19  ;;  %s112_s24 = sadd.s32 1, %s912_s17 }
   0x8   : > { %p35_p0 = scmp.ge.s32.totalorder %s33_s23, 2  ;;  %p122_p1 = scmp.ne.s32.totalorder %s912_s17, %s908_s16 }
   0x9   : > { %p123_p2 = scmp.eq.s32.totalorder %s692_s21, 1  ;;  %p128_p3 = scmp.ne.s32.totalorder %s908_s16, %s904_s15 }
   0xa   : > { %s1279_s23 = smov (%p35_p0, %s33_s23), 0  ;;  %p129_p5 = scmp.eq.s32.totalorder %s693_s22, 1 }
   0xb   : > { %p997_p4 = por %p123_p2, %p122_p1  ;;  %s107_s26 = ssub.s32 %s920_s19, %s1279_s23 }
   0xc   : > { %p696_p6 = scmp.ge.s32.totalorder %s924_s20, 1  ;;  %p110_p7 = scmp.eq.s32.totalorder %s107_s26, 0 }
   0xd   : > { %p1004_p8 = por %p129_p5, %p128_p3  ;;  %p194_p9 = scmp.lt.s32.totalorder %s924_s20, 3 }
   0xe   : > { %s1010_s28 = scalar_select %p110_p7, %s912_s17, %s112_s24  }
   0xf   : > { %p195_p10 = pnand %p696_p6, %p194_p9 }
  0x10   : > { %p230_p11 = scmp.lt.s32.totalorder (!%p195_p10), %s916_s18, 1  ;;  %v926_v0 = vmov (!%p195_p10), 0.0   ;;  %v927_v1 = vmov (!%p195_p10), 0   ;;  %v255_v2 = vld [vmem:[%s1268_s2 + $0x10] sm:$0xff] (!%p195_p10)  ;;  %v253_v3 = vld [vmem:[%s1268_s2] sm:$0xff] (!%p195_p10)  ;;  %v256_v17 = vld [vmem:[%s1268_s2 + $0x18] sm:$0xff] (!%p195_p10) }
  0x11   : > { %198 = sbr.rel (%p195_p10) target bundleno = 314 (0x13a), region = 32  ;;  %442 = vmatprep.mubr.f32.mxu0 (!%p195_p10), %v926_v0  ;;  %478 = vmatprep.mubr.f32.mxu1 (!%p195_p10), %v926_v0  ;;  %v254_v18 = vld [vmem:[%s1268_s2 + $0x8] sm:$0xff] (!%p195_p10)  ;;  %v257_v26 = vld [vmem:[%s1268_s2 + $0x20] sm:$0xff] (!%p195_p10)  ;;  %v260_v31 = vld [vmem:[%s1268_s2 + $0x38] sm:$0xff] (!%p195_p10)  ;;  %vm341_vm0 = vcmask (!%p195_p10), 523264   ;;  %s1134_s8 = sand.u32 (!%p195_p10), 1, %s908_s16  }
  0x12   : > { %813 = vset.pattern.permute.xlu1 (!%p195_p10), %v927_v1  ;;  %812 = vset.pattern.permute.xlu0 (!%p195_p10), %v927_v1  ;;  %v258_v25 = vld [vmem:[%s1268_s2 + $0x28] sm:$0xff] (!%p195_p10)  ;;  %v259_v32 = vld [vmem:[%s1268_s2 + $0x30] sm:$0xff] (!%p195_p10)  ;;  %v261_v35 = vld [vmem:[%s1268_s2 + $0x40] sm:$0xff] (!%p195_p10)  ;;  %s697_s9 = sshll.u32 (!%p195_p10), %s1134_s8, 6  ;;  %s698_s10 = sshll.u32 (!%p195_p10), %s1134_s8, 7 }
  0x13   : > { %293 = vperm.xlu1 (!%p195_p10), %813, %v255_v2   ;;  %283 = vperm.xlu0 (!%p195_p10), %812, %v253_v3   ;;  %v262_v34 = vld [vmem:[%s1268_s2 + $0x48] sm:$0xff] (!%p195_p10)  ;;  %v241_v36 = vld [vmem:[%s1267_s1] sm:$0xff] (!%p195_p10)  ;;  %v247_v37 = vld [vmem:[%s1267_s1 + $0x30] sm:$0xff] (!%p195_p10)  ;;  %s1143_s12 = scalar_lea.vmem (!%p195_p10), [#allocation4], %s698_s10  ;;  %s722_s13 = sshll.u32 (!%p195_p10), %s916_s18, 10 }
  0x14   : > { %v264_v38 = vld [vmem:[%s1268_s2 + $0x58] sm:$0xff] (!%p195_p10)  ;;  %v263_v39 = vld [vmem:[%s1268_s2 + $0x50] sm:$0xff] (!%p195_p10)  ;;  %v242_v40 = vld [vmem:[%s1267_s1 + $0x8] sm:$0xff] (!%p195_p10)  ;;  %s1161_s24 = scalar_lea.hbm (!%p195_p10), %s1269_s3, %s722_s13  ;;  %s540_s26 = scalar_lea.sflag (!%p195_p10), [#allocation3], %s1134_s8 }
  0x15   : > { %v248_v41 = vld [vmem:[%s1267_s1 + $0x38] sm:$0xff] (!%p195_p10)  ;;  %v243_v42 = vld [vmem:[%s1267_s1 + $0x10] sm:$0xff] (!%p195_p10)  ;;  %v249_v43 = vld [vmem:[%s1267_s1 + $0x40] sm:$0xff] (!%p195_p10) }
  0x16   : > { %v244_v44 = vld [vmem:[%s1267_s1 + $0x18] sm:$0xff] (!%p195_p10)  ;;  %v250_v45 = vld [vmem:[%s1267_s1 + $0x48] sm:$0xff] (!%p195_p10)  ;;  %v245_v46 = vld [vmem:[%s1267_s1 + $0x20] sm:$0xff] (!%p195_p10) }
  0x17   : > { %298 = vperm.xlu1 (!%p195_p10), %813, %v256_v17   ;;  %288 = vperm.xlu0 (!%p195_p10), %812, %v254_v18   ;;  %v251_v47 = vld [vmem:[%s1267_s1 + $0x50] sm:$0xff] (!%p195_p10)  ;;  %v246_v48 = vld [vmem:[%s1267_s1 + $0x28] sm:$0xff] (!%p195_p10)  ;;  %v252_v49 = vld [vmem:[%s1267_s1 + $0x58] sm:$0xff] (!%p195_p10) }
  0x18   : > { %s231_s29 = scalar_select %p230_p11, %s916_s18, 1 }
  0x1a   : > { %s721_s30 = sshll.u32 %s231_s29, 7 }
  0x1b   : > { %s1025_s11 = scalar_lea.vmem %s1266_s0, %s721_s30  ;;  %308 = vperm.xlu1 %813, %v258_v25   ;;  %303 = vperm.xlu0 %812, %v257_v26   ;;  %s928_s30 = smov [#allocation2]  }
  0x1c   : > { %v266_v4 = vld [vmem:[%s1025_s11 + $0x8] sm:$0xff]  ;;  %v268_v5 = vld [vmem:[%s1025_s11 + $0x18] sm:$0xff]  ;;  %v265_v6 = vld [vmem:[%s1025_s11] sm:$0xff]  ;;  %s818_s5 = sshll.u32 %s928_s30, 4  ;;  %s819_s5 = int_to_ptr.vmem [resolvable:$false] %s818_s5 }
  0x1d   : > { %v724_v7 = vpack.c.bf16 %v268_v5, %v266_v4  ;;  %v267_v8 = vld [vmem:[%s1025_s11 + $0x10] sm:$0xff]  ;;  %v270_v9 = vld [vmem:[%s1025_s11 + $0x28] sm:$0xff]  ;;  %v272_v10 = vld [vmem:[%s1025_s11 + $0x38] sm:$0xff]  ;;  %s820_s6 = scalar_lea.vmem %s819_s5, 2048 }
  0x1e   : > { %v726_v11 = vpack.c.bf16 %v267_v8, %v265_v6  ;;  %v728_v12 = vpack.c.bf16 %v272_v10, %v270_v9  ;;  %v269_v13 = vld [vmem:[%s1025_s11 + $0x20] sm:$0xff]  ;;  %v271_v14 = vld [vmem:[%s1025_s11 + $0x30] sm:$0xff]  ;;  %v274_v15 = vld [vmem:[%s1025_s11 + $0x48] sm:$0xff] }
  0x1f   : > { %725 = vmatprep.subr.bf16.mxu0 %v724_v7  ;;  %740 = vmatprep.subr.bf16.mxu1 %v724_v7  ;;  %v276_v16 = vld [vmem:[%s1025_s11 + $0x58] sm:$0xff]  ;;  %v730_v19 = vpack.c.bf16 %v271_v14, %v269_v13  ;;  %v273_v21 = vld [vmem:[%s1025_s11 + $0x40] sm:$0xff]  ;;  %v275_v22 = vld [vmem:[%s1025_s11 + $0x50] sm:$0xff] }
  0x20   : > { %727 = vmatpush1.bf16.msra.mxu0 %v726_v11  ;;  %744 = vmatpush1.bf16.msra.mxu1 %v726_v11  ;;  %v732_v20 = vpack.c.bf16 %v276_v16, %v274_v15  ;;  %v278_v23 = vld [vmem:[%s1025_s11 + $0x68] sm:$0xff]  ;;  %v280_v24 = vld [vmem:[%s1025_s11 + $0x78] sm:$0xff]  ;;  %v734_v27 = vpack.c.bf16 %v275_v22, %v273_v21  ;;  %v277_v29 = vld [vmem:[%s1025_s11 + $0x60] sm:$0xff] }
  0x21   : > { %729 = vmatprep.subr.bf16.mxu0 %v728_v12  ;;  %741 = vmatprep.subr.bf16.mxu1 %v728_v12  ;;  %v736_v28 = vpack.c.bf16 %v280_v24, %v278_v23  ;;  %v279_v30 = vld [vmem:[%s1025_s11 + $0x70] sm:$0xff]  ;;  %s1140_s11 = scalar_lea.vmem [#allocation2], %s697_s9 }
  0x22   : > { %v738_v33 = vpack.c.bf16 %v279_v30, %v277_v29  ;;  %318 = vperm.xlu1 %813, %v260_v31   ;;  %313 = vperm.xlu0 %812, %v259_v32   ;;  %s560_s14 = sshll.u32 %s1140_s11, 4  ;;  %s1163_s14 = int_to_ptr.vmem [resolvable:$true] %s560_s14 }
  0x23   : > { %s814_s29 = scalar_lea.vmem %s1163_s14, 1024  ;;  %p821_p1 = scmp.lt.s32.totalorder %s1163_s14, %s819_s5 }
  0x24   : > { %731 = vmatpush1.bf16.msra.mxu0 %v730_v19  ;;  %745 = vmatpush1.bf16.msra.mxu1 %v730_v19  ;;  %p815_p12 = scmp.ne.s32.totalorder %s1163_s14, %s814_s29  ;;  %p822_p2 = scmp.lt.s32.totalorder %s820_s6, %s814_s29 }
  0x25   : > { %733 = vmatprep.subr.bf16.mxu0 %v732_v20  ;;  %742 = vmatprep.subr.bf16.mxu1 %v732_v20 }
  0x26   : > { %328 = vperm.xlu1 %813, %v262_v34   ;;  %323 = vperm.xlu0 %812, %v261_v35   ;;  %p816_p13 = pnand %p815_p12, %p997_p4  ;;  %p823_p3 = por %p822_p2, %p821_p1 }
  0x28   : > { %735 = vmatpush1.bf16.msra.mxu0 %v734_v27  ;;  %746 = vmatpush1.bf16.msra.mxu1 %v734_v27  ;;  %p817_p0 = pneg %p816_p13 }
  0x29   : > { %737 = vmatprep.subr.bf16.mxu0 %v736_v28  ;;  %743 = vmatprep.subr.bf16.mxu1 %v736_v28 }
  0x2a   : > { %338 = vperm.xlu1 %813, %v264_v38   ;;  %333 = vperm.xlu0 %812, %v263_v39   ;;  %p824_p5 = pnand %p823_p3, %p817_p0 }
  0x2c   : > { %739 = vmatpush1.bf16.msra.mxu0 %v738_v33  ;;  %747 = vmatpush1.bf16.msra.mxu1 %v738_v33 }
  0x2f   : > { %701 = vmatmul.mubr.msk.f32.vlgmr.msra.gmra.mrb[0].mxu0 %vm341_vm0, %v241_v36  ;;  %707 = vmatmul.mubr.msk.f32.vlgmr.msra.gmra.mrb[0].mxu1 %vm341_vm0, %v247_v37 }
  0x30   : > { %448 = vmatprep.mubr.f32.mxu0 %v926_v0  ;;  %484 = vmatprep.mubr.f32.mxu1 %v926_v0 }
  0x33   : > { %702 = vmatmul.mubr.msk.f32.gmra.mrb[2].mxu0 %vm341_vm0, %v242_v40  ;;  %708 = vmatmul.mubr.msk.f32.gmra.mrb[2].mxu1 %vm341_vm0, %v248_v41 }
  0x34   : > { %454 = vmatprep.mubr.f32.mxu0 %v926_v0  ;;  %490 = vmatprep.mubr.f32.mxu1 %v926_v0 }
  0x37   : > { %703 = vmatmul.mubr.msk.f32.gmra.mrb[4].mxu0 %vm341_vm0, %v243_v42  ;;  %709 = vmatmul.mubr.msk.f32.gmra.mrb[4].mxu1 %vm341_vm0, %v249_v43 }
  0x38   : > { %460 = vmatprep.mubr.f32.mxu0 %v926_v0  ;;  %496 = vmatprep.mubr.f32.mxu1 %v926_v0 }
  0x3b   : > { %704 = vmatmul.mubr.msk.f32.gmra.mrb[6].mxu0 %vm341_vm0, %v244_v44  ;;  %710 = vmatmul.mubr.msk.f32.gmra.mrb[6].mxu1 %vm341_vm0, %v250_v45 }
  0x3c   : > { %466 = vmatprep.mubr.f32.mxu0 %v926_v0  ;;  %502 = vmatprep.mubr.f32.mxu1 %v926_v0 }
  0x3f   : > { %705 = vmatmul.mubr.msk.f32.gmra.mrb[8].mxu0 %vm341_vm0, %v245_v46  ;;  %711 = vmatmul.mubr.msk.f32.gmra.mrb[8].mxu1 %vm341_vm0, %v251_v47 }
  0x40   : > { %472 = vmatprep.mubr.f32.mxu0 %v926_v0  ;;  %508 = vmatprep.mubr.f32.mxu1 %v926_v0 }
  0x43   : > { %706 = vmatmul.mubr.msk.f32.gmra.mrb[10].mxu0 %vm341_vm0, %v246_v48  ;;  %712 = vmatmul.mubr.msk.f32.gmra.mrb[10].mxu1 %vm341_vm0, %v252_v49 }
  0x92   : > { %v284_v50 = vpop.permute.xlu0 %283  ;;  %v294_v51 = vpop.permute.xlu1 %293 }
  0x96   : > { %v289_v52 = vpop.permute.xlu0 %288  ;;  %v299_v53 = vpop.permute.xlu1 %298 }
  0x9a   : > { %v1131_v54 = vpop.permute.xlu0 %303  ;;  %v1136_v55 = vpop.permute.xlu1 %308 }
  0xa1   : > { %v314_v56 = vpop.permute.xlu0 %313  ;;  %v319_v1 = vpop.permute.xlu1 %318 }
  0xa5   : > { %v324_v10 = vpop.permute.xlu0 %323  ;;  %v329_v19 = vpop.permute.xlu1 %328 }
  0xa9   : > { %v334_v28 = vpop.permute.xlu0 %333 }
 0x102   : > { %v444_v57 = vpop.f32.mrb[0].mxu0  ;;  %v480_v58 = vpop.f32.mrb[0].mxu1 }
 0x103   : > { %v445_v59 = vadd.f32 %v444_v57, %v284_v50  ;;  %v481_v60 = vadd.f32 %v480_v58, %v314_v56  ;;  %v446_v61 = vpop.f32.mrb[1].mxu0  ;;  %v482_v62 = vpop.f32.mrb[1].mxu1 }
 0x104   : > { %v447_v63 = vadd.f32 %v446_v61, %v284_v50  ;;  %v483_v0 = vadd.f32 %v482_v62, %v314_v56 }
 0x105   : > { %515 = vst [vmem:[%s1140_s11] sm:$0xff] %v445_v59  ;;  %527 = vst [vmem:[%s1143_s12 + $0x20] sm:$0xff] %v481_v60 }
 0x106   : > { %516 = vst [vmem:[%s1140_s11 + $0x8] sm:$0xff] %v447_v63  ;;  %528 = vst [vmem:[%s1143_s12 + $0x28] sm:$0xff] %v483_v0  ;;  %v450_v2 = vpop.f32.mrb[2].mxu0  ;;  %v486_v3 = vpop.f32.mrb[2].mxu1 }
 0x107   : > { %v451_v4 = vadd.f32 %v450_v2, %v289_v52  ;;  %v487_v5 = vadd.f32 %v486_v3, %v319_v1  ;;  %v452_v6 = vpop.f32.mrb[3].mxu0  ;;  %v488_v7 = vpop.f32.mrb[3].mxu1 }
 0x108   : > { %v453_v8 = vadd.f32 %v452_v6, %v289_v52  ;;  %v489_v9 = vadd.f32 %v488_v7, %v319_v1 }
 0x109   : > { %517 = vst [vmem:[%s1140_s11 + $0x10] sm:$0xff] %v451_v4  ;;  %529 = vst [vmem:[%s1143_s12 + $0x30] sm:$0xff] %v487_v5 }
 0x10a   : > { %518 = vst [vmem:[%s1140_s11 + $0x18] sm:$0xff] %v453_v8  ;;  %530 = vst [vmem:[%s1143_s12 + $0x38] sm:$0xff] %v489_v9  ;;  %v456_v11 = vpop.f32.mrb[4].mxu0  ;;  %v492_v12 = vpop.f32.mrb[4].mxu1 }
 0x10b   : > { %v457_v13 = vadd.f32 %v456_v11, %v294_v51  ;;  %v493_v14 = vadd.f32 %v492_v12, %v324_v10  ;;  %v458_v15 = vpop.f32.mrb[5].mxu0  ;;  %v494_v16 = vpop.f32.mrb[5].mxu1 }
 0x10c   : > { %v459_v17 = vadd.f32 %v458_v15, %v294_v51  ;;  %v495_v18 = vadd.f32 %v494_v16, %v324_v10 }
 0x10d   : > { %519 = vst [vmem:[%s1140_s11 + $0x20] sm:$0xff] %v457_v13  ;;  %531 = vst [vmem:[%s1143_s12 + $0x40] sm:$0xff] %v493_v14 }
 0x10e   : > { %520 = vst [vmem:[%s1140_s11 + $0x28] sm:$0xff] %v459_v17  ;;  %532 = vst [vmem:[%s1143_s12 + $0x48] sm:$0xff] %v495_v18  ;;  %v462_v20 = vpop.f32.mrb[6].mxu0  ;;  %v498_v21 = vpop.f32.mrb[6].mxu1 }
 0x10f   : > { %v463_v22 = vadd.f32 %v462_v20, %v299_v53  ;;  %v499_v23 = vadd.f32 %v498_v21, %v329_v19  ;;  %v464_v24 = vpop.f32.mrb[7].mxu0  ;;  %v500_v25 = vpop.f32.mrb[7].mxu1 }
 0x110   : > { %v465_v26 = vadd.f32 %v464_v24, %v299_v53  ;;  %v501_v27 = vadd.f32 %v500_v25, %v329_v19 }
 0x111   : > { %521 = vst [vmem:[%s1140_s11 + $0x30] sm:$0xff] %v463_v22  ;;  %533 = vst [vmem:[%s1143_s12 + $0x50] sm:$0xff] %v499_v23 }
 0x112   : > { %522 = vst [vmem:[%s1140_s11 + $0x38] sm:$0xff] %v465_v26  ;;  %534 = vst [vmem:[%s1143_s12 + $0x58] sm:$0xff] %v501_v27  ;;  %v468_v29 = vpop.f32.mrb[8].mxu0  ;;  %v504_v30 = vpop.f32.mrb[8].mxu1 }
 0x113   : > { %v469_v31 = vadd.f32 %v468_v29, %v1131_v54  ;;  %v505_v32 = vadd.f32 %v504_v30, %v334_v28  ;;  %v470_v33 = vpop.f32.mrb[9].mxu0  ;;  %v506_v34 = vpop.f32.mrb[9].mxu1 }
 0x114   : > { %827 = shalt.err (!%p824_p5)
}
 0x115   : > { %s828_s7 = scalar_lea.hbm %s1161_s24, 1024  ;;  %s832_s11 = scalar_lea.hbm %s1269_s3, 2048 }
 0x116   : > { %p829_p6 = scmp.ne.s32.totalorder %s1161_s24, %s828_s7  ;;  %p833_p10 = scmp.lt.u32.totalorder %s1161_s24, %s1269_s3 }
 0x117   : > { %p834_p11 = scmp.lt.u32.totalorder %s832_s11, %s828_s7  ;;  %p836_p13 = scmp.lt.u32.totalorder %s828_s7, %s1161_s24 }
 0x118   : > { %p830_p7 = pnand %p829_p6, %p997_p4 }
 0x119   : > { %p835_p12 = por %p834_p11, %p833_p10 }
 0x11a   : > { %p831_p9 = pneg %p830_p7 }
 0x11b   : > { %p837_p0 = por %p836_p13, %p835_p12 }
 0x11d   : > { %p838_p1 = pnand %p837_p0, %p831_p9 }
 0x11f   : > { %841 = shalt.err (!%p838_p1)
}
 0x120   : > { %s929_s22 = smov 256   ;;  %s930_s29 = smov 16   ;;  %v471_v35 = vadd.f32 %v470_v33, %v1131_v54  ;;  %v507_v36 = vadd.f32 %v506_v34, %v334_v28  ;;  %v339_v37 = vpop.permute.xlu1 %338  ;;  %523 = vst [vmem:[%s1143_s12] sm:$0xff] %v469_v31  ;;  %535 = vst [vmem:[%s1143_s12 + $0x60] sm:$0xff] %v505_v32  ;;  %v474_v38 = vpop.f32.mrb[10].mxu0 }
 0x121   : > { %748 = dma.vmem_to_hbm [thread:$0]  (%p997_p4), %s1163_s14, 1024, %s1161_s24, %s540_s26, %s929_s22, %s929_s22, %s930_s29   ;;  %v510_v39 = vpop.f32.mrb[10].mxu1  ;;  %v475_v40 = vadd.f32 %v474_v38, %v1136_v55  ;;  %v476_v42 = vpop.f32.mrb[11].mxu0 }
 0x122   : > { %s723_s30 = sshll.u32 %s916_s18, 11  ;;  %s578_s5 = sshll.u32 %s1143_s12, 4  ;;  %524 = vst [vmem:[%s1143_s12 + $0x8] sm:$0xff] %v471_v35  ;;  %536 = vst [vmem:[%s1143_s12 + $0x68] sm:$0xff] %v507_v36  ;;  %v511_v41 = vadd.f32 %v510_v39, %v339_v37  ;;  %v512_v43 = vpop.f32.mrb[11].mxu1  ;;  %v477_v44 = vadd.f32 %v476_v42, %v1136_v55  ;;  %s1211_s5 = int_to_ptr.vmem [resolvable:$true] %s578_s5 }
 0x123   : > { %v513_v45 = vadd.f32 %v512_v43, %v339_v37  ;;  %s1209_s18 = scalar_lea.hbm %s1270_s4, %s723_s30  ;;  %525 = vst [vmem:[%s1143_s12 + $0x10] sm:$0xff] %v475_v40  ;;  %s545_s26 = scalar_lea.sflag [#allocation5], %s1134_s8 }
 0x124   : > { %537 = vst [vmem:[%s1143_s12 + $0x70] sm:$0xff] %v511_v41  ;;  %526 = vst [vmem:[%s1143_s12 + $0x18] sm:$0xff] %v477_v44  ;;  %s842_s6 = scalar_lea.vmem %s1211_s5, 2048  ;;  %s931_s7 = smov [#allocation4]  }
 0x125   : > { %538 = vst [vmem:[%s1143_s12 + $0x78] sm:$0xff] %v513_v45  ;;  %p843_p2 = scmp.ne.s32.totalorder %s1211_s5, %s842_s6  ;;  %s846_s9 = sshll.u32 %s931_s7, 4  ;;  %s847_s9 = int_to_ptr.vmem [resolvable:$false] %s846_s9 }
 0x126   : > { %s848_s10 = scalar_lea.vmem %s847_s9, 4096  ;;  %p849_p6 = scmp.lt.s32.totalorder %s1211_s5, %s847_s9 }
 0x127   : > { %p844_p3 = pnand %p843_p2, %p997_p4  ;;  %p850_p7 = scmp.lt.s32.totalorder %s848_s10, %s842_s6 }
 0x129   : > { %p845_p5 = pneg %p844_p3  ;;  %p851_p9 = por %p850_p7, %p849_p6 }
 0x12b   : > { %p852_p10 = pnand %p851_p9, %p845_p5 }
 0x12d   : > { %855 = shalt.err (!%p852_p10)
}
 0x12e   : > { %s856_s12 = scalar_lea.hbm %s1209_s18, 2048  ;;  %s860_s21 = scalar_lea.hbm %s1270_s4, 4096 }
 0x12f   : > { %p857_p11 = scmp.ne.s32.totalorder %s1209_s18, %s856_s12  ;;  %p861_p0 = scmp.lt.u32.totalorder %s1209_s18, %s1270_s4 }
 0x130   : > { %p862_p1 = scmp.lt.u32.totalorder %s860_s21, %s856_s12  ;;  %p864_p3 = scmp.lt.u32.totalorder %s856_s12, %s1209_s18 }
 0x131   : > { %p858_p12 = pnand %p857_p11, %p997_p4 }
 0x132   : > { %p863_p2 = por %p862_p1, %p861_p0 }
 0x133   : > { %p859_p13 = pneg %p858_p12 }
 0x134   : > { %p865_p5 = por %p864_p3, %p863_p2 }
 0x136   : > { %p866_p6 = pnand %p865_p5, %p859_p13 }
 0x138   : > { %869 = shalt.err (!%p866_p6)
}
 0x139   : > { %749 = dma.vmem_to_hbm [thread:$0]  (%p997_p4), %s1211_s5, 2048, %s1209_s18, %s545_s26, %s929_s22, %s929_s22, %s930_s29  }
 0x13a PF: > { %p759_p7 = scmp.ge.s32.totalorder %s924_s20, 2  ;;  %s593_s24 = sand.u32 1, %s904_s15  }
 0x13b   : > { %s594_s6 = scalar_lea.sflag [#allocation3], %s593_s24 }
 0x13c   : > { %p753_p9 = pnand %p759_p7, %p1004_p8 }
 0x13e   : > { %895 = dma.done.wait (!%p753_p9), %s594_s6, 1024  }
 0x13f   : > { %897 = vsyncadd (!%p753_p9), %s594_s6, 4294966272  ;;  %s603_s25 = scalar_lea.sflag [#allocation5], %s593_s24 }
 0x140   : > { %899 = dma.done.wait (!%p753_p9), %s603_s25, 2048  }
 0x141   : > { %901 = vsyncadd (!%p753_p9), %s603_s25, 4294965248  ;;  %s21_s20 = sadd.s32 1, %s924_s20   ;;  %s1273_s15 = smov %s908_s16 }
 0x142   : > { %p18_p10 = scmp.ge.s32.totalorder %s21_s20, 4   ;;  %s1274_s16 = smov %s912_s17 }
 0x143   : > { %s1275_s17 = smov %s1010_s28  ;;  %s1276_s18 = smov %s920_s19 }
 0x144   : > { %s1277_s19 = smov %s1279_s23  ;;  %20 = sbr.rel (!%p18_p10) target bundleno = 6 (0x6), region = 84 }
 0x14b   :  { %608 = vsyncpa [#allocation3], 1 }
 0x14c   :  { %610 = vsyncpa [#allocation3 + $0x1], 1 }
 0x14d   :  { %611 = vsyncpa [#allocation5], 1 }
 0x14e   :  { %613 = vsyncpa [#allocation5 + $0x1], 1 }

</bundles_post_ra>
